<compile_context>
chip_gen: v6e
topology: v6e:2x2x1
jax: 0.10.0
libtpu: 0.0.40
codegen_flags: <defaults>
</compile_context>

<pallas_src>
import jax
import jax.numpy as jnp
from jax.experimental import pallas as pl
from jax.experimental.pallas import tpu as pltpu


def _decoder_kernel(f1_ref, f2_ref, o_ref):
    # f1_ref: (tu, tv) tile of feature1
    # f2_ref: (tv, tu) tile of feature2 (transposed on the XLU inside the kernel)
    f1 = f1_ref[...].astype(jnp.float32)
    f2t = f2_ref[...].T.astype(jnp.float32)
    x = f1 + f2t
    # sigmoid(x / 2) == 0.5 + 0.5 * tanh(x * 0.25)  (single EUP op)
    o_ref[...] = (0.5 + 0.5 * jnp.tanh(x * 0.25)).astype(o_ref.dtype)


# Tile caps: tv is the lane (last) dim of feature1/output, so it gets the
# larger cap; tu is still a lane dim for the transposed feature2 tile, so both
# stay multiples of 128.
_TU_CAP = 512
_TV_CAP = 1024


def _pick_tile(dim, cap):
    """Pick a 128-multiple tile size (or the full dim for tiny inputs).

    - dim <= 128: full-extent block (always legal).
    - otherwise: largest multiple of 128 <= min(cap, dim) that divides dim;
      if none divides, clamp to that 128-multiple cap and let the pl.cdiv grid
      handle the ragged last block (safe for this elementwise kernel).
    """
    if dim <= 128:
        return dim
    start = (min(cap, dim) // 128) * 128
    for t in range(start, 127, -128):
        if dim % t == 0:
            return t
    return start  # ragged edge: never returns a huge full-dim tile anymore


def inner_product_decoder(feature1, feature2, *, tu=None, tv=None):
    """Pallas implementation of InnerProductDecoder.forward (eval mode).

    feature1: [U, V]
    feature2: [V, U]
    returns:  [U, V] = sigmoid((feature1 + feature2.T) / 2)
    """
    U, V = feature1.shape
    assert feature2.shape == (V, U), "feature2 must be [V, U]"

    auto_tu = tu is None
    tu = _pick_tile(U, _TU_CAP) if auto_tu else tu
    tv = _pick_tile(V, _TV_CAP) if tv is None else tv
    # Tiles must be 128-multiples (lane-dense for both orientations) or the
    # full dim; they need NOT divide the array dims (ragged edges are masked).
    assert tu == U or (tu % 128 == 0 and tu <= U), \
        "tu must be a multiple of 128 (<= U) or equal to U"
    assert tv == V or (tv % 128 == 0 and tv <= V), \
        "tv must be a multiple of 128 (<= V) or equal to V"

    # Keep >=2 blocks along the "parallel" U axis when cheap, so v7x can shard
    # across its 2 TensorCores and the DMA pipeline has more than one step.
    if auto_tu and pl.cdiv(U, tu) == 1 and pl.cdiv(V, tv) == 1 and tu % 256 == 0:
        tu //= 2

    grid = (pl.cdiv(U, tu), pl.cdiv(V, tv))

    itemsize = jnp.dtype(feature1.dtype).itemsize
    # f1 + f2 + out tiles, double-buffered, plus margin for f32 temporaries.
    tile_bytes = tu * tv * itemsize
    vmem_bytes = int(min(48 << 20, max(16 << 20, 6 * tile_bytes + (8 << 20))))

    cost = pl.CostEstimate(
        flops=3 * U * V,
        transcendentals=U * V,
        bytes_accessed=3 * U * V * itemsize,
    )

    return pl.pallas_call(
        _decoder_kernel,
        out_shape=jax.ShapeDtypeStruct((U, V), feature1.dtype),
        grid_spec=pltpu.PrefetchScalarGridSpec(
            num_scalar_prefetch=0,
            grid=grid,
            in_specs=[
                # feature1 tile (tu, tv) at block (i, j)
                pl.BlockSpec((tu, tv), lambda i, j: (i, j)),
                # feature2 tile (tv, tu) at block (j, i) -> transposed in-kernel
                pl.BlockSpec((tv, tu), lambda i, j: (j, i)),
            ],
            out_specs=pl.BlockSpec((tu, tv), lambda i, j: (i, j)),
        ),
        compiler_params=pltpu.CompilerParams(
            dimension_semantics=("parallel", "parallel"),
            vmem_limit_bytes=vmem_bytes,
        ),
        cost_estimate=cost,
    )(feature1, feature2)


def _reference(feature1, feature2):
    return jax.nn.sigmoid((feature1 + feature2.T) / 2.0)


if __name__ == "__main__":
    key = jax.random.PRNGKey(0)
    k1, k2 = jax.random.split(key)

    # Small shapes consistent with the module (size_u x size_v link matrix).
    size_u, size_v = 256, 384
    feature1 = jax.random.normal(k1, (size_u, size_v), dtype=jnp.float32)
    feature2 = jax.random.normal(k2, (size_v, size_u), dtype=jnp.float32)
    ref = _reference(feature1, feature2)

    # Explicit 128x128 tiles -> 2x3 grid, exercises the transposed f2 index_map.
    out = jax.block_until_ready(
        inner_product_decoder(feature1, feature2, tu=128, tv=128))
    assert out.shape == (size_u, size_v)
    assert jnp.allclose(out, ref, atol=1e-5, rtol=1e-5), "mismatch (tiled)"

    # Auto tile selection (grid kept >= 2 blocks along U for TC sharding).
    out2 = jax.block_until_ready(inner_product_decoder(feature1, feature2))
    assert jnp.allclose(out2, ref, atol=1e-5, rtol=1e-5), "mismatch (auto)"

    # Ragged-edge path: dims not multiples of 128 (tile clamps, cdiv grid masks).
    f1r = jax.random.normal(k1, (200, 300), dtype=jnp.float32)
    f2r = jax.random.normal(k2, (300, 200), dtype=jnp.float32)
    out3 = jax.block_until_ready(inner_product_decoder(f1r, f2r))
    assert jnp.allclose(out3, _reference(f1r, f2r), atol=1e-5, rtol=1e-5), \
        "mismatch (ragged)"

    # Tiny-shape path: full-dim blocks.
    f1s = jax.random.normal(k1, (16, 32), dtype=jnp.float32)
    f2s = jax.random.normal(k2, (32, 16), dtype=jnp.float32)
    out4 = jax.block_until_ready(inner_product_decoder(f1s, f2s))
    assert jnp.allclose(out4, _reference(f1s, f2s), atol=1e-5, rtol=1e-5), \
        "mismatch (small)"

    # bf16 I/O halves HBM traffic (~2x on this bandwidth-bound op); compute
    # stays f32 in-kernel (operands cast before the add).
    f1b = feature1.astype(jnp.bfloat16)
    f2b = feature2.astype(jnp.bfloat16)
    out5 = jax.block_until_ready(inner_product_decoder(f1b, f2b))
    refb = _reference(f1b.astype(jnp.float32), f2b.astype(jnp.float32))
    assert jnp.allclose(out5.astype(jnp.float32), refb, atol=2e-2, rtol=2e-2), \
        "mismatch (bf16)"

    print("KERNEL_OK")
</pallas_src>

<mosaic_0001>
module attributes {stable_mosaic.version = 11 : i64} {
  func.func @_decoder_kernel(%arg0: i32, %arg1: i32, %arg2: memref<128x128xf32, #tpu.memory_space<vmem>>, %arg3: memref<128x128xf32, #tpu.memory_space<vmem>>, %arg4: memref<128x128xf32, #tpu.memory_space<vmem>>) attributes {dimension_semantics = [#tpu.dimension_semantics<parallel>, #tpu.dimension_semantics<parallel>], iteration_bounds = array<i64: 2, 3>, scalar_prefetch = 0 : i64, scratch_operands = 0 : i64, tpu.core_type = #tpu.core_type<tc>, window_params = [{transform_indices = @transform_0, window_bounds = array<i64: 128, 128>}, {transform_indices = @transform_1, window_bounds = array<i64: 128, 128>}, {transform_indices = @transform_2, window_bounds = array<i64: 128, 128>}]} {
    %c0 = arith.constant 0 : index
    %c0_0 = arith.constant 0 : index
    %0 = vector.load %arg2[%c0, %c0_0] : memref<128x128xf32, #tpu.memory_space<vmem>>, vector<128x128xf32>
    %c0_1 = arith.constant 0 : index
    %c0_2 = arith.constant 0 : index
    %1 = vector.load %arg3[%c0_1, %c0_2] : memref<128x128xf32, #tpu.memory_space<vmem>>, vector<128x128xf32>
    %2 = tpu.transpose %1, [1, 0] : vector<128x128xf32> -> vector<128x128xf32>
    %3 = arith.addf %0, %2 : vector<128x128xf32>
    %cst = arith.constant 2.500000e-01 : f32
    %4 = vector.broadcast %cst : f32 to vector<128x128xf32>
    %5 = arith.mulf %3, %4 : vector<128x128xf32>
    %6 = math.tanh %5 : vector<128x128xf32>
    %cst_3 = arith.constant 5.000000e-01 : f32
    %7 = vector.broadcast %cst_3 : f32 to vector<128x128xf32>
    %8 = arith.mulf %7, %6 : vector<128x128xf32>
    %cst_4 = arith.constant 5.000000e-01 : f32
    %9 = vector.broadcast %cst_4 : f32 to vector<128x128xf32>
    %10 = arith.addf %9, %8 : vector<128x128xf32>
    %c0_5 = arith.constant 0 : index
    %c0_6 = arith.constant 0 : index
    %11 = vector.load %arg4[%c0_5, %c0_6] : memref<128x128xf32, #tpu.memory_space<vmem>>, vector<128x128xf32>
    tpu.vector_store %arg4[%c0_5, %c0_6], %10 {strides = array<i32>} : memref<128x128xf32, #tpu.memory_space<vmem>>, vector<128x128xf32>,
    return
  }
  func.func @transform_0(%arg0: i32, %arg1: i32) -> (i32, i32) {
    %c0_i32 = arith.constant 0 : i32
    return %arg0, %arg1 : i32, i32
  }
  func.func @transform_1(%arg0: i32, %arg1: i32) -> (i32, i32) {
    %c0_i32 = arith.constant 0 : i32
    return %arg1, %arg0 : i32, i32
  }
  func.func @transform_2(%arg0: i32, %arg1: i32) -> (i32, i32) {
    %c0_i32 = arith.constant 0 : i32
    return %arg0, %arg1 : i32, i32
  }
}

</mosaic_0001>

<bundles_post_ra>
// kernel: tpu_custom_call.1
= control target key start
LH: loop header
LB: loop body
LE: loop exit
PB: predicated region body
PF: predicated region fallthrough
CT: control target
= control target key end

     0   :  { %s1109_s0 = inlined_call_operand.hbm [shape: f32[256,384], index: 0, kind: input, shape index: {}]   ;;  %s1110_s1 = inlined_call_operand.hbm [shape: f32[384,256], index: 1, kind: input, shape index: {}]   ;;  %s1111_s2 = inlined_call_operand.hbm [shape: f32[256,384], index: 2, kind: output, shape index: {}]  }
   0x1   :  { %1117 = sst [smem:[#allocation16_spill]] %s1109_s0 }
   0x2   :  { %7 = vsyncpa [#allocation3], 0 }
   0x3   :  { %9 = vsyncpa [#allocation3 + $0x1], 0 }
   0x4   :  { %10 = vsyncpa [#allocation6], 0 }
   0x5   :  { %12 = vsyncpa [#allocation6 + $0x1], 0 }
   0x6   :  { %13 = vsyncpa [#allocation4], 0 }
   0x7   :  { %15 = vsyncpa [#allocation4 + $0x1], 0  ;;  %s846_s9 = smov 0   ;;  %s848_s10 = smov 0  }
   0x8   :  { %s850_s11 = smov 0   ;;  %s852_s12 = smov 0  }
   0x9   :  { %s854_s13 = smov 0   ;;  %s856_s14 = smov 0  }
   0xa   :  { %s858_s15 = smov 0   ;;  %s860_s16 = smov 0  }
   0xb LB: > { %1118 = sst [smem:[#allocation11_spill]] %s799_s11  ;;  %s516_s17 = sadd.s32 4294967295, %s819_s16   ;;  %s819_s16 = sphi %s860_s16, %s21_s16   ;;  %s815_s15 = sphi %s858_s15, %s1141_s15   ;;  %s811_s14 = sphi %s856_s14, %s1140_s14   ;;  %s807_s13 = sphi %s854_s13, %s1139_s13   ;;  %s803_s12 = sphi %s852_s12, %s1138_s12   ;;  %s799_s11 = sphi %s850_s11, %s1133_s11   ;;  %s795_s10 = sphi %s848_s10, %s1137_s10   ;;  %s791_s9 = sphi %s846_s9, %s1136_s9  }
   0xc   : > { %s517_s18 = sadd.s32 4294967294, %s819_s16   ;;  %s30_s19 = sadd.s32 1, %s811_s14 }
   0xd   : > { %s33_s20 = sadd.s32 1, %s815_s15  ;;  %p31_p0 = scmp.ge.s32.totalorder %s30_s19, 3 }
   0xe   : > { %s42_s21 = sadd.s32 1, %s799_s11  ;;  %p49_p1 = scmp.ne.s32.totalorder %s799_s11, %s795_s10 }
   0xf   : > { %p50_p2 = scmp.eq.s32.totalorder %s819_s16, 0  ;;  %s1143_s19 = smov (%p31_p0, %s30_s19), 0 }
  0x10   : > { %1119 = sst [smem:[#allocation12_spill]] %s1143_s19  ;;  %s1145_s20 = smov (!%p31_p0, %s33_s20), %s815_s15 }
  0x11   : > { %s38_s22 = ssub.s32 %s811_s14, %s1143_s19  ;;  %p899_p3 = por %p50_p2, %p49_p1 }
  0x12   : > { %p35_p4 = scmp.ge.s32.totalorder %s1145_s20, 2  ;;  %p55_p5 = scmp.ne.s32.totalorder %s795_s10, %s791_s9 }
  0x13   : > { %p56_p6 = scmp.eq.s32.totalorder %s516_s17, 0  ;;  %p109_p7 = scmp.eq.s32.totalorder %s516_s17, 5 }
  0x14   : > { %s1147_s20 = smov (%p35_p4, %s1145_s20), 0  ;;  %p115_p10 = scmp.eq.s32.totalorder %s517_s18, 5 }
  0x15   : > { %1121 = sst [smem:[#allocation13_spill]] %s1147_s20  ;;  %p907_p8 = por %p56_p6, %p55_p5 }
  0x16   : > { %p911_p9 = por %p109_p7, %p49_p1  ;;  %s37_s26 = ssub.s32 %s815_s15, %s1147_s20 }
  0x17   : > { %s39_s27 = sor.u32 %s38_s22, %s37_s26  ;;  %p917_p12 = por %p115_p10, %p55_p5 }
  0x18   : > { %p40_p11 = scmp.eq.s32.totalorder %s39_s27, 0  ;;  %p558_p13 = scmp.lt.s32.totalorder %s819_s16, 6 }
  0x19   : > { %s1124_s28 = scalar_select %p917_p12, 1, 0 }
  0x1a   : > { %s923_s29 = sand.u32 1, %s799_s11   ;;  %s539_s4 = smul.u32 48, %s815_s15 }
  0x1b   : > { %1125 = sst [smem:[#allocation14_spill]] %s1124_s28  ;;  %s1112_s3 = sshll.u32 %s923_s29, 7 }
  0x1c   : > { %s926_s30 = scalar_select %p40_p11, %s799_s11, %s42_s21  }
  0x1d   : > { %s139_s5 = scalar_lea.vmem [#allocation2], %s1112_s3  ;;  %p934_p0 = pnand %p558_p13, %p899_p3 }
  0x1e   : > { %1126 = sst [smem:[#allocation15_spill]] %s926_s30  ;;  %s148_s6 = sshll.u32 %s139_s5, 4  ;;  %s149_s6 = int_to_ptr.vmem [resolvable:$true] %s148_s6 }
  0x1f   : > { %s145_s8 = sadd.s32 %s811_s14, %s539_s4  ;;  %s1128_s0 = sld [smem:[#allocation16_spill]] }
  0x20   : > { %s523_s17 = sshll.u32 %s145_s8, 7  ;;  %s136_s26 = scalar_lea.sflag [#allocation3], %s923_s29 }
  0x21   : > { %p665_p1 = pneg %p934_p0  ;;  %s676_s27 = scalar_lea.vmem %s149_s6, 2048 }
  0x22   : > { %p677_p2 = scmp.ne.s32.totalorder %s149_s6, %s676_s27  ;;  %s821_s23 = smov [#allocation2]  }
  0x23   : > { %s681_s5 = sshll.u32 %s821_s23, 4  ;;  %s682_s5 = int_to_ptr.vmem [resolvable:$false] %s681_s5 }
  0x24   : > { %p679_p3 = pnand %p677_p2, %p665_p1  ;;  %s683_s3 = scalar_lea.vmem %s682_s5, 4096 }
  0x25   : > { %s147_s21 = scalar_lea.hbm %s1128_s0, %s523_s17  ;;  %p684_p5 = scmp.lt.s32.totalorder %s149_s6, %s682_s5 }
  0x26   : > { %p680_p4 = pneg %p679_p3  ;;  %p685_p6 = scmp.lt.s32.totalorder %s683_s3, %s676_s27 }
  0x28   : > { %p686_p7 = por %p685_p6, %p684_p5 }
  0x2a   : > { %p687_p10 = pnand %p686_p7, %p680_p4 }
  0x2c   : > { %690 = shalt.err (!%p687_p10)
}
  0x2d   : > { %s822_s4 = smov 384   ;;  %s823_s8 = smov 128  }
  0x2e   : > { %s824_s17 = smov 8   ;;  %p528_p11 = scmp.ge.s32.totalorder %s819_s16, 1 }
  0x2f   : > { %550 = dma.hbm_to_vmem [thread:$0]  (!%p934_p0), %s147_s21, 2048, %s149_s6, %s136_s26, %s822_s4, %s823_s8, %s824_s17  }
  0x30   : > { %p179_p13 = scmp.lt.s32.totalorder %s819_s16, 7  ;;  %s538_s18 = sshll.u32 %s811_s14, 5 }
  0x31   : > { %s168_s22 = sadd.s32 %s815_s15, %s538_s18  ;;  %s1130_s27 = sshll.u32 %s923_s29, 7 }
  0x32   : > { %p954_p2 = pnand %p528_p11, %p179_p13  ;;  %s162_s23 = scalar_lea.vmem [#allocation5], %s1130_s27 }
  0x33   : > { %s171_s5 = sshll.u32 %s162_s23, 4  ;;  %s527_s0 = sshll.u32 %s168_s22, 7  ;;  %s172_s5 = int_to_ptr.vmem [resolvable:$true] %s171_s5 }
  0x34   : > { %s170_s30 = scalar_lea.hbm %s1110_s1, %s527_s0  ;;  %s159_s11 = scalar_lea.sflag [#allocation6], %s923_s29 }
  0x35   : > { %s704_s28 = scalar_lea.vmem %s172_s5, 2048  ;;  %s825_s6 = smov [#allocation5]  }
  0x36   : > { %p705_p3 = scmp.ne.s32.totalorder %s172_s5, %s704_s28  ;;  %s709_s21 = sshll.u32 %s825_s6, 4  ;;  %s710_s21 = int_to_ptr.vmem [resolvable:$false] %s709_s21 }
  0x37   : > { %s711_s26 = scalar_lea.vmem %s710_s21, 4096  ;;  %p712_p6 = scmp.lt.s32.totalorder %s172_s5, %s710_s21 }
  0x38   : > { %p707_p4 = pnand %p705_p3, %p665_p1  ;;  %p713_p7 = scmp.lt.s32.totalorder %s711_s26, %s704_s28 }
  0x3a   : > { %p708_p5 = pneg %p707_p4  ;;  %p714_p10 = por %p713_p7, %p712_p6 }
  0x3c   : > { %p715_p11 = pnand %p714_p10, %p708_p5 }
  0x3e   : > { %718 = shalt.err (!%p715_p11)
}
  0x3f   : > { %s826_s4 = smov 256   ;;  %183 = sbr.rel (%p954_p2) target bundleno = 294 (0x126), region = 28 }
  0x40   : > { %553 = dma.hbm_to_vmem [thread:$0]  (!%p934_p0), %s170_s30, 2048, %s172_s5, %s159_s11, %s826_s4, %s823_s8, %s824_s17  }
  0x41   : > { %s976_s0 = sand.u32 (!%p954_p2), 1, %s795_s10  }
  0x42   : > { %s979_s19 = sshll.u32 (!%p954_p2), %s976_s0, 7  ;;  %s186_s20 = scalar_lea.sflag (!%p954_p2), [#allocation3], %s976_s0 }
  0x43   : > { %s983_s28 = scalar_lea.vmem (!%p954_p2), [#allocation2], %s979_s19 }
  0x44   : > { %778 = dma.done.wait (%p907_p8), %s186_s20, 2048  }
  0x45   : > { %780 = vsyncadd (%p907_p8), %s186_s20, 4294965248  ;;  %s195_s11 = scalar_lea.sflag [#allocation6], %s976_s0  ;;  %s991_s29 = scalar_lea.vmem [#allocation5], %s979_s19 }
  0x46   : > { %782 = dma.done.wait (%p907_p8), %s195_s11, 2048  }
  0x47   : > { %784 = vsyncadd (%p907_p8), %s195_s11, 4294965248  ;;  %v243_v0 = vld [vmem:[%s991_s29] sm:$0xff]  ;;  %v244_v1 = vld [vmem:[%s991_s29 + $0x8] sm:$0xff]  ;;  %s1021_s24 = scalar_lea.vmem [#allocation7], %s979_s19  ;;  %s540_s30 = smul.u32 48, %s807_s13 }
  0x48   : > { %259 = vxpose.xlu0.b32.start [1/16] %v243_v0, 128  ;;  %v245_v2 = vld [vmem:[%s991_s29 + $0x10] sm:$0xff]  ;;  %v246_v3 = vld [vmem:[%s991_s29 + $0x18] sm:$0xff]  ;;  %v247_v4 = vld [vmem:[%s991_s29 + $0x20] sm:$0xff]  ;;  %s403_s17 = sshll.u32 %s1021_s24, 4  ;;  %s827_s27 = smov [#allocation7]   ;;  %s1055_s17 = int_to_ptr.vmem [resolvable:$true] %s403_s17 }
  0x49   : > { %v248_v5 = vld [vmem:[%s991_s29 + $0x28] sm:$0xff]  ;;  %v249_v6 = vld [vmem:[%s991_s29 + $0x30] sm:$0xff]  ;;  %v250_v7 = vld [vmem:[%s991_s29 + $0x38] sm:$0xff]  ;;  %s400_s7 = sadd.s32 %s803_s12, %s540_s30  ;;  %s388_s12 = scalar_lea.sflag [#allocation4], %s976_s0 }
  0x4a   : > { %v251_v8 = vld [vmem:[%s991_s29 + $0x40] sm:$0xff]  ;;  %v252_v9 = vld [vmem:[%s991_s29 + $0x48] sm:$0xff]  ;;  %v253_v10 = vld [vmem:[%s991_s29 + $0x50] sm:$0xff]  ;;  %s535_s8 = sshll.u32 %s400_s7, 7  ;;  %s719_s22 = scalar_lea.vmem %s1055_s17, 2048 }
  0x4b   : > { %v254_v11 = vld [vmem:[%s991_s29 + $0x58] sm:$0xff]  ;;  %v255_v12 = vld [vmem:[%s991_s29 + $0x60] sm:$0xff]  ;;  %v256_v13 = vld [vmem:[%s991_s29 + $0x68] sm:$0xff]  ;;  %s1053_s13 = scalar_lea.hbm %s1111_s2, %s535_s8  ;;  %p720_p8 = scmp.ne.s32.totalorder %s1055_s17, %s719_s22 }
  0x4c   : > { %260 = vxpose.xlu0.b32.cont [2/16] %v244_v1, 128  ;;  %v257_v14 = vld [vmem:[%s991_s29 + $0x70] sm:$0xff]  ;;  %v258_v15 = vld [vmem:[%s991_s29 + $0x78] sm:$0xff]  ;;  %v227_v16 = vld [vmem:[%s983_s28] sm:$0xff]  ;;  %s723_s23 = sshll.u32 %s827_s27, 4  ;;  %s724_s23 = int_to_ptr.vmem [resolvable:$false] %s723_s23 }
  0x4d   : > { %v228_v19 = vld [vmem:[%s983_s28 + $0x8] sm:$0xff]  ;;  %v229_v23 = vld [vmem:[%s983_s28 + $0x10] sm:$0xff]  ;;  %v230_v27 = vld [vmem:[%s983_s28 + $0x18] sm:$0xff]  ;;  %p721_p0 = pnand %p720_p8, %p911_p9  ;;  %s725_s5 = scalar_lea.vmem %s724_s23, 4096 }
  0x4e   : > { %v231_v31 = vld [vmem:[%s983_s28 + $0x20] sm:$0xff]  ;;  %v232_v36 = vld [vmem:[%s983_s28 + $0x28] sm:$0xff]  ;;  %v233_v43 = vld [vmem:[%s983_s28 + $0x30] sm:$0xff]  ;;  %p726_p13 = scmp.lt.s32.totalorder %s1055_s17, %s724_s23  ;;  %p727_p2 = scmp.lt.s32.totalorder %s725_s5, %s719_s22 }
  0x4f   : > { %v234_v50 = vld [vmem:[%s983_s28 + $0x38] sm:$0xff]  ;;  %v235_v57 = vld [vmem:[%s983_s28 + $0x40] sm:$0xff]  ;;  %v236_v0 = vld [vmem:[%s983_s28 + $0x48] sm:$0xff]  ;;  %p722_p1 = pneg %p721_p0 }
  0x50   : > { %261 = vxpose.xlu0.b32.cont [3/16] %v245_v2, 128  ;;  %p728_p3 = por %p727_p2, %p726_p13 }
  0x52   : > { %p729_p4 = pnand %p728_p3, %p722_p1 }
  0x54   : > { %262 = vxpose.xlu0.b32.cont [4/16] %v246_v3, 128 }
  0x58   : > { %263 = vxpose.xlu0.b32.cont [5/16] %v247_v4, 128 }
  0x5c   : > { %264 = vxpose.xlu0.b32.cont [6/16] %v248_v5, 128 }
  0x60   : > { %265 = vxpose.xlu0.b32.cont [7/16] %v249_v6, 128 }
  0x64   : > { %266 = vxpose.xlu0.b32.cont [8/16] %v250_v7, 128  ;;  %v237_v7 = vld [vmem:[%s983_s28 + $0x50] sm:$0xff] }
  0x68   : > { %267 = vxpose.xlu0.b32.cont [9/16] %v251_v8, 128 }
  0x6c   : > { %268 = vxpose.xlu0.b32.cont [10/16] %v252_v9, 128 }
  0x70   : > { %269 = vxpose.xlu0.b32.cont [11/16] %v253_v10, 128 }
  0x74   : > { %270 = vxpose.xlu0.b32.cont [12/16] %v254_v11, 128 }
  0x78   : > { %271 = vxpose.xlu0.b32.cont [13/16] %v255_v12, 128 }
  0x7c   : > { %272 = vxpose.xlu0.b32.cont [14/16] %v256_v13, 128 }
  0x80   : > { %273 = vxpose.xlu0.b32.cont [15/16] %v257_v14, 128  ;;  %v238_v14 = vld [vmem:[%s983_s28 + $0x58] sm:$0xff] }
  0x84   : > { %274 = vxpose.xlu0.b32.end [16/16] %v258_v15, 128 }
  0xc4   : > { %v275_v17 = vpop.trf.xlu0 }
  0xc5   : > { %v291_v18 = vadd.f32 %v275_v17, %v227_v16 }
  0xc7   : > { %v307_v20 = vmul.f32 0.25, %v291_v18 }
  0xc8   : > { %v276_v21 = vpop.trf.xlu0 }
  0xc9   : > { %631 = vtanh.f32 %v307_v20  ;;  %v292_v22 = vadd.f32 %v276_v21, %v228_v19  ;;  %v239_v21 = vld [vmem:[%s983_s28 + $0x60] sm:$0xff] }
  0xcb   : > { %v308_v24 = vmul.f32 0.25, %v292_v22 }
  0xcc   : > { %v277_v25 = vpop.trf.xlu0 }
  0xcd   : > { %633 = vtanh.f32 %v308_v24  ;;  %v293_v26 = vadd.f32 %v277_v25, %v229_v23 }
  0xcf   : > { %v309_v28 = vmul.f32 0.25, %v293_v26 }
  0xd0   : > { %v278_v29 = vpop.trf.xlu0 }
  0xd1   : > { %635 = vtanh.f32 %v309_v28  ;;  %v294_v30 = vadd.f32 %v278_v29, %v230_v27  ;;  %v240_v28 = vld [vmem:[%s983_s28 + $0x68] sm:$0xff] }
  0xd3   : > { %v310_v32 = vmul.f32 0.25, %v294_v30 }
  0xd4   : > { %v279_v33 = vpop.trf.xlu0 }
  0xd5   : > { %637 = vtanh.f32 %v310_v32  ;;  %v295_v34 = vadd.f32 %v279_v33, %v231_v31 }
  0xd6   : > { %v632_v35 = vpop.eup %631 }
  0xd7   : > { %v339_v37 = vmul.f32 0.5, %v632_v35  ;;  %v311_v38 = vmul.f32 0.25, %v295_v34  ;;  %v241_v35 = vld [vmem:[%s983_s28 + $0x70] sm:$0xff] }
  0xd8   : > { %v280_v39 = vpop.trf.xlu0 }
  0xd9   : > { %v355_v40 = vadd.f32 0.5, %v339_v37  ;;  %639 = vtanh.f32 %v311_v38  ;;  %v296_v41 = vadd.f32 %v280_v39, %v232_v36 }
  0xda   : > { %v634_v42 = vpop.eup %633 }
  0xdb   : > { %371 = vst [vmem:[%s1021_s24] sm:$0xff] %v355_v40  ;;  %v340_v44 = vmul.f32 0.5, %v634_v42  ;;  %v312_v45 = vmul.f32 0.25, %v296_v41  ;;  %v242_v42 = vld [vmem:[%s983_s28 + $0x78] sm:$0xff] }
  0xdc   : > { %v281_v46 = vpop.trf.xlu0 }
  0xdd   : > { %v356_v47 = vadd.f32 0.5, %v340_v44  ;;  %641 = vtanh.f32 %v312_v45  ;;  %v297_v48 = vadd.f32 %v281_v46, %v233_v43 }
  0xde   : > { %v636_v49 = vpop.eup %635 }
  0xdf   : > { %372 = vst [vmem:[%s1021_s24 + $0x8] sm:$0xff] %v356_v47  ;;  %v341_v51 = vmul.f32 0.5, %v636_v49  ;;  %v313_v52 = vmul.f32 0.25, %v297_v48 }
  0xe0   : > { %v282_v53 = vpop.trf.xlu0 }
  0xe1   : > { %v357_v54 = vadd.f32 0.5, %v341_v51  ;;  %643 = vtanh.f32 %v313_v52  ;;  %v298_v55 = vadd.f32 %v282_v53, %v234_v50 }
  0xe2   : > { %v638_v56 = vpop.eup %637 }
  0xe3   : > { %373 = vst [vmem:[%s1021_s24 + $0x10] sm:$0xff] %v357_v54  ;;  %v342_v58 = vmul.f32 0.5, %v638_v56  ;;  %v314_v59 = vmul.f32 0.25, %v298_v55 }
  0xe4   : > { %v283_v60 = vpop.trf.xlu0 }
  0xe5   : > { %v358_v61 = vadd.f32 0.5, %v342_v58  ;;  %645 = vtanh.f32 %v314_v59  ;;  %v299_v62 = vadd.f32 %v283_v60, %v235_v57 }
  0xe6   : > { %v640_v63 = vpop.eup %639 }
  0xe7   : > { %374 = vst [vmem:[%s1021_s24 + $0x18] sm:$0xff] %v358_v61  ;;  %v343_v1 = vmul.f32 0.5, %v640_v63  ;;  %v315_v2 = vmul.f32 0.25, %v299_v62 }
  0xe8   : > { %v284_v3 = vpop.trf.xlu0 }
  0xe9   : > { %v359_v4 = vadd.f32 0.5, %v343_v1  ;;  %647 = vtanh.f32 %v315_v2  ;;  %v300_v5 = vadd.f32 %v284_v3, %v236_v0 }
  0xea   : > { %v642_v6 = vpop.eup %641 }
  0xeb   : > { %375 = vst [vmem:[%s1021_s24 + $0x20] sm:$0xff] %v359_v4  ;;  %v344_v8 = vmul.f32 0.5, %v642_v6  ;;  %v316_v9 = vmul.f32 0.25, %v300_v5 }
  0xec   : > { %v285_v10 = vpop.trf.xlu0 }
  0xed   : > { %v360_v11 = vadd.f32 0.5, %v344_v8  ;;  %649 = vtanh.f32 %v316_v9  ;;  %v301_v12 = vadd.f32 %v285_v10, %v237_v7 }
  0xee   : > { %v644_v13 = vpop.eup %643 }
  0xef   : > { %376 = vst [vmem:[%s1021_s24 + $0x28] sm:$0xff] %v360_v11  ;;  %v345_v15 = vmul.f32 0.5, %v644_v13  ;;  %v317_v16 = vmul.f32 0.25, %v301_v12 }
  0xf0   : > { %v286_v17 = vpop.trf.xlu0 }
  0xf1   : > { %v361_v18 = vadd.f32 0.5, %v345_v15  ;;  %651 = vtanh.f32 %v317_v16  ;;  %v302_v19 = vadd.f32 %v286_v17, %v238_v14 }
  0xf2   : > { %v646_v20 = vpop.eup %645 }
  0xf3   : > { %377 = vst [vmem:[%s1021_s24 + $0x30] sm:$0xff] %v361_v18  ;;  %v346_v22 = vmul.f32 0.5, %v646_v20  ;;  %v318_v23 = vmul.f32 0.25, %v302_v19 }
  0xf4   : > { %v287_v24 = vpop.trf.xlu0 }
  0xf5   : > { %v362_v25 = vadd.f32 0.5, %v346_v22  ;;  %653 = vtanh.f32 %v318_v23  ;;  %v303_v26 = vadd.f32 %v287_v24, %v239_v21 }
  0xf6   : > { %v648_v27 = vpop.eup %647 }
  0xf7   : > { %378 = vst [vmem:[%s1021_s24 + $0x38] sm:$0xff] %v362_v25  ;;  %v347_v29 = vmul.f32 0.5, %v648_v27  ;;  %v319_v30 = vmul.f32 0.25, %v303_v26 }
  0xf8   : > { %v288_v31 = vpop.trf.xlu0 }
  0xf9   : > { %v363_v32 = vadd.f32 0.5, %v347_v29  ;;  %655 = vtanh.f32 %v319_v30  ;;  %v304_v33 = vadd.f32 %v288_v31, %v240_v28 }
  0xfa   : > { %v650_v34 = vpop.eup %649 }
  0xfb   : > { %379 = vst [vmem:[%s1021_s24 + $0x40] sm:$0xff] %v363_v32  ;;  %v348_v36 = vmul.f32 0.5, %v650_v34  ;;  %v320_v37 = vmul.f32 0.25, %v304_v33 }
  0xfc   : > { %v289_v38 = vpop.trf.xlu0 }
  0xfd   : > { %v364_v39 = vadd.f32 0.5, %v348_v36  ;;  %657 = vtanh.f32 %v320_v37  ;;  %v305_v40 = vadd.f32 %v289_v38, %v241_v35 }
  0xfe   : > { %v652_v41 = vpop.eup %651 }
  0xff   : > { %380 = vst [vmem:[%s1021_s24 + $0x48] sm:$0xff] %v364_v39  ;;  %v349_v43 = vmul.f32 0.5, %v652_v41  ;;  %v321_v44 = vmul.f32 0.25, %v305_v40 }
 0x100   : > { %v290_v45 = vpop.trf.xlu0 }
 0x101   : > { %v365_v46 = vadd.f32 0.5, %v349_v43  ;;  %659 = vtanh.f32 %v321_v44  ;;  %v306_v47 = vadd.f32 %v290_v45, %v242_v42 }
 0x102   : > { %v654_v48 = vpop.eup %653 }
 0x103   : > { %381 = vst [vmem:[%s1021_s24 + $0x50] sm:$0xff] %v365_v46  ;;  %v350_v49 = vmul.f32 0.5, %v654_v48  ;;  %v322_v50 = vmul.f32 0.25, %v306_v47 }
 0x105   : > { %v366_v51 = vadd.f32 0.5, %v350_v49  ;;  %661 = vtanh.f32 %v322_v50 }
 0x106   : > { %v656_v52 = vpop.eup %655 }
 0x107   : > { %382 = vst [vmem:[%s1021_s24 + $0x58] sm:$0xff] %v366_v51  ;;  %v351_v53 = vmul.f32 0.5, %v656_v52 }
 0x109   : > { %v367_v54 = vadd.f32 0.5, %v351_v53 }
 0x10a   : > { %v658_v55 = vpop.eup %657 }
 0x10b   : > { %383 = vst [vmem:[%s1021_s24 + $0x60] sm:$0xff] %v367_v54  ;;  %v352_v56 = vmul.f32 0.5, %v658_v55 }
 0x10d   : > { %v368_v57 = vadd.f32 0.5, %v352_v56 }
 0x10e   : > { %v660_v58 = vpop.eup %659 }
 0x10f   : > { %384 = vst [vmem:[%s1021_s24 + $0x68] sm:$0xff] %v368_v57  ;;  %v353_v59 = vmul.f32 0.5, %v660_v58 }
 0x111   : > { %v369_v60 = vadd.f32 0.5, %v353_v59 }
 0x112   : > { %v662_v61 = vpop.eup %661 }
 0x113   : > { %385 = vst [vmem:[%s1021_s24 + $0x70] sm:$0xff] %v369_v60  ;;  %v354_v62 = vmul.f32 0.5, %v662_v61 }
 0x115   : > { %v370_v63 = vadd.f32 0.5, %v354_v62 }
 0x117   : > { %386 = vst [vmem:[%s1021_s24 + $0x78] sm:$0xff] %v370_v63 }
 0x118   : > { %732 = shalt.err (!%p729_p4)
}
 0x119   : > { %s733_s6 = scalar_lea.hbm %s1053_s13, 2048  ;;  %s737_s4 = scalar_lea.hbm %s1111_s2, 12288 }
 0x11a   : > { %p734_p5 = scmp.ne.s32.totalorder %s1053_s13, %s733_s6  ;;  %p738_p10 = scmp.lt.s32.totalorder %s1053_s13, %s1111_s2 }
 0x11b   : > { %p739_p11 = scmp.lt.s32.totalorder %s737_s4, %s733_s6 }
 0x11c   : > { %p735_p6 = pnand %p734_p5, %p911_p9 }
 0x11d   : > { %p740_p8 = por %p739_p11, %p738_p10 }
 0x11e   : > { %p736_p7 = pneg %p735_p6 }
 0x120   : > { %p741_p0 = pnand %p740_p8, %p736_p7 }
 0x122   : > { %744 = shalt.err (!%p741_p0)
}
 0x123   : > { %s828_s28 = smov 128   ;;  %s829_s11 = smov 384  }
 0x124   : > { %s830_s29 = smov 8  }
 0x125   : > { %545 = dma.vmem_to_hbm [thread:$0]  (%p911_p9), %s1055_s17, 2048, %s1053_s13, %s388_s12, %s828_s28, %s829_s11, %s830_s29  }
 0x126 PF: > { %p559_p1 = scmp.ge.s32.totalorder %s819_s16, 2  ;;  %s418_s30 = sand.u32 1, %s791_s9  }
 0x127   : > { %s419_s7 = scalar_lea.sflag [#allocation4], %s418_s30 }
 0x128   : > { %p555_p13 = pnand %p559_p1, %p917_p12 }
 0x12a   : > { %p556_p2 = pneg %p555_p13 }
 0x12c   : > { %786 = dma.done.wait (%p556_p2), %s419_s7, 2048  }
 0x12d   : > { %788 = vsyncadd (%p556_p2), %s419_s7, 4294965248  ;;  %s21_s16 = sadd.s32 1, %s819_s16   ;;  %s1132_s8 = sld [smem:[#allocation11_spill]] }
 0x12e   : > { %p18_p3 = scmp.ge.s32.totalorder %s21_s16, 8   ;;  %s1133_s11 = sld [smem:[#allocation15_spill]] }
 0x12f   : > { %s1134_s25 = sld [smem:[#allocation12_spill]]  ;;  %s1136_s9 = smov %s795_s10 }
 0x130   : > { %s1135_s0 = sld [smem:[#allocation13_spill]]  ;;  %s1138_s12 = smov %s811_s14 }
 0x131   : > { %s1139_s13 = smov %s815_s15 }
 0x132   :  { %20 = sbr.rel (!%p18_p3) target bundleno = 11 (0xb), region = 86 }
 0x133   : > { %s1137_s10 = smov %s1132_s8 }
 0x135   : > { %s1140_s14 = smov %s1134_s25 }
 0x136   : > { %s1141_s15 = smov %s1135_s0 }
 0x137   :  { %424 = vsyncpa [#allocation3], 1 }
 0x138   :  { %426 = vsyncpa [#allocation3 + $0x1], 1 }
 0x139   :  { %427 = vsyncpa [#allocation6], 1 }
 0x13a   :  { %429 = vsyncpa [#allocation6 + $0x1], 1 }
 0x13b   :  { %430 = vsyncpa [#allocation4], 1 }
 0x13c   :  { %432 = vsyncpa [#allocation4 + $0x1], 1 }

</bundles_post_ra>
